<compile_context>
chip_gen: v7x
topology: tpu7x:2x2x1
jax: 0.10.0
libtpu: 0.0.40
codegen_flags: <defaults>
</compile_context>

<pallas_src>
import jax
import jax.numpy as jnp
from jax.experimental import pallas as pl
from jax.experimental.pallas import tpu as pltpu


# ----------------------------------------------------------------------------
# Parameter initialization (mirrors nn.Parameter(torch.tensor(0.2)))
# ----------------------------------------------------------------------------
def init_pix_contrast_params():
    return {
        "dist": jnp.asarray(0.2, dtype=jnp.float32),  # learnable scalar (unused by forward)
        "thresh": 5,                                   # python attr (unused by forward)
        "max_epoch": None,                             # python attr (unused by forward)
    }


# ----------------------------------------------------------------------------
# Pallas kernel: single HBM -> HBM async DMA copy (no VMEM staging).
# ----------------------------------------------------------------------------
def _hbm_copy_kernel(src_ref, dst_ref, sem):
    cp = pltpu.make_async_copy(src_ref, dst_ref, sem)
    cp.start()
    cp.wait()


def _lane_dense_view_shape(total):
    """Largest multiple-of-128 lane width that divides `total`, else None."""
    for lane in (1024, 512, 256, 128):
        if total % lane == 0:
            return (total // lane, lane)
    return None


def _hbm_copy(x):
    """One pallas_call issuing a full-array HBM->HBM DMA; returns the copy."""
    orig_shape = x.shape
    view_shape = _lane_dense_view_shape(x.size)
    # Reshape of a contiguous array is free (metadata only); fall back to the
    # original shape when the size does not divide 128 — the DMA copies the
    # whole ref either way, so traffic is identical.
    slab = x.reshape(view_shape) if view_shape is not None else x

    out = pl.pallas_call(
        _hbm_copy_kernel,
        out_shape=jax.ShapeDtypeStruct(slab.shape, slab.dtype),
        in_specs=[pl.BlockSpec(memory_space=pl.ANY)],
        out_specs=pl.BlockSpec(memory_space=pl.ANY),
        scratch_shapes=[pltpu.SemaphoreType.DMA(())],
    )(slab)

    return out.reshape(orig_shape)


_hbm_copy_jit = jax.jit(_hbm_copy)


def feature_identity_pass(feature, *, min_bytes=1 << 20):
    """Identity pass over `feature`.

    The reference forward() does no work, so by default small tensors
    (< min_bytes) are returned untouched — no kernel launch, no HBM traffic.
    Larger tensors (or min_bytes=0) go through a single HBM->HBM DMA copy
    inside a Pallas kernel, which is the minimal-cost way to produce a fresh
    physical copy (one HBM read + one HBM write, no VMEM/vreg round trip).
    """
    nbytes = feature.size * jnp.dtype(feature.dtype).itemsize
    if nbytes < min_bytes:
        return feature
    return _hbm_copy_jit(feature)


# ----------------------------------------------------------------------------
# Forward wrapper — exact semantics of PixContrasrt.forward (which is `pass`).
# ----------------------------------------------------------------------------
def pix_contrast_forward(params, feature, label, iteration):
    # TODO(synk): reference forward() body is empty (`pass`); there is no loss
    # computation defined to translate, so this returns None like the module.
    return None


# ----------------------------------------------------------------------------
# Demo / smoke test
# ----------------------------------------------------------------------------
if __name__ == "__main__":
    key = jax.random.PRNGKey(0)
    k_feat, k_lab = jax.random.split(key)

    # Small shapes consistent with a pixel-contrast setting:
    #   feature: NCHW feature map, label: per-pixel integer labels.
    feature = jax.random.normal(k_feat, (2, 4, 16, 16), dtype=jnp.float32)
    label = jax.random.randint(k_lab, (2, 16, 16), 0, 5, dtype=jnp.int32)
    iteration = 1

    params = init_pix_contrast_params()

    # Faithful forward: returns None (matches the PyTorch module).
    result = pix_contrast_forward(params, feature, label, iteration)
    assert result is None

    # Default path: tiny input short-circuits — no kernel, zero overhead.
    same = feature_identity_pass(feature)
    assert same is feature

    # Force the Pallas HBM->HBM DMA kernel once and verify the round trip.
    out = feature_identity_pass(feature, min_bytes=0)
    out = jax.block_until_ready(out)
    assert out.shape == feature.shape
    assert out.dtype == feature.dtype
    assert jnp.allclose(out, feature)

    print("KERNEL_OK")
</pallas_src>

<mosaic_0001>
module attributes {stable_mosaic.version = 11 : i64} {
  func.func @_hbm_copy_kernel(%arg0: memref<2x1024xf32, #tpu.memory_space<any>>, %arg1: memref<2x1024xf32, #tpu.memory_space<any>>, %arg2: memref<!tpu.dma_semaphore, #tpu.memory_space<semaphore_mem>>) attributes {dimension_semantics = [], scalar_prefetch = 0 : i64, scratch_operands = 1 : i64, tpu.core_type = #tpu.core_type<tc>} {
    tpu.enqueue_dma source(%arg0 : memref<2x1024xf32, #tpu.memory_space<any>>) target(%arg1 : memref<2x1024xf32, #tpu.memory_space<any>>) target_semaphore(%arg2 : memref<!tpu.dma_semaphore, #tpu.memory_space<semaphore_mem>>)
    tpu.wait_dma2 semaphore(%arg2 : memref<!tpu.dma_semaphore, #tpu.memory_space<semaphore_mem>>) src(%arg0 : memref<2x1024xf32, #tpu.memory_space<any>>) dst(%arg1 : memref<2x1024xf32, #tpu.memory_space<any>>)
    return
  }
}

</mosaic_0001>

<bundles_post_ra>
// kernel: _hbm_copy.1
= control target key start
LH: loop header
LB: loop body
LE: loop exit
PB: predicated region body
PF: predicated region fallthrough
CT: control target
= control target key end

     0   :  { %s93_s0 = inlined_call_operand.vmem [shape: f32[2,1024], index: 0, kind: input, shape index: {}]   ;;  %s94_s1 = inlined_call_operand.vmem [shape: f32[2,1024], index: 1, kind: output, shape index: {}]  }
   0x1   :  { %v38_v0 = vld [vmem:[%s93_s0] sm:$0xff]  ;;  %v40_v1 = vld [vmem:[%s93_s0 + $0x8] sm:$0xff] }
   0x2   :  { %39 = vst [vmem:[%s94_s1] sm:$0xff] %v38_v0  ;;  %41 = vst [vmem:[%s94_s1 + $0x8] sm:$0xff] %v40_v1 }
   0x3   :  { %49 = vsyncadd [#allocation2], 256 }
   0x4   :  { %69 = dma.done.wait [#allocation2], 256 }
   0x5   :  { %70 = vsyncadd [#allocation2], 4294967040 }
   0x6   :  { %54 = vsyncmov [#allocation2] }
   0x9   :  { %s55_s14 = vpop.sfrf %54 }
   0xa   :  { %p68_p0 = scmp.ne.s32.totalorder %s55_s14, 0 }
   0xc   :  { %59 = shalt.err (%p68_p0)  }

</bundles_post_ra>
